<compile_context>
chip_gen: v7x
topology: tpu7x:2x2x1
jax: 0.10.0
libtpu: 0.0.40
codegen_flags: <defaults>
</compile_context>

<pallas_src>
import jax
import jax.numpy as jnp
from jax import lax
from jax.experimental import pallas as pl
from jax.experimental.pallas import tpu as pltpu


def _round_up(x, m):
    return ((x + m - 1) // m) * m


# -----------------------------------------------------------------------------
# Kernel 1: generic tiled matmul + bias   out = x @ w + b
# Used for (a) the one-time projected-embedding-table precompute and
# (b) the deferred output head. K is kept whole; M and N are tiled and both
# grid axes are independent ("parallel" -> megacore sharding on v7x).
# -----------------------------------------------------------------------------
def _matmul_bias_kernel(x_ref, w_ref, b_ref, o_ref):
    o_ref[...] = (
        jnp.dot(x_ref[...], w_ref[...], preferred_element_type=jnp.float32)
        + b_ref[...]
    ).astype(o_ref.dtype)


def matmul_bias(x, w, b, *, out_dtype=jnp.float32, m_blk=256, n_blk=512):
    M, K = x.shape
    K2, N = w.shape
    assert K == K2 and b.shape == (1, N)
    m_blk = min(M, m_blk)          # full dim if small, else multiple of 8
    n_blk = min(N, n_blk)          # N is padded to a multiple of 128 by callers
    grid = (pl.cdiv(M, m_blk), pl.cdiv(N, n_blk))
    return pl.pallas_call(
        _matmul_bias_kernel,
        out_shape=jax.ShapeDtypeStruct((M, N), out_dtype),
        grid=grid,
        in_specs=[
            pl.BlockSpec((m_blk, K), lambda i, j: (i, 0)),
            pl.BlockSpec((K, n_blk), lambda i, j: (0, j)),
            pl.BlockSpec((1, n_blk), lambda i, j: (0, j)),
        ],
        out_specs=pl.BlockSpec((m_blk, n_blk), lambda i, j: (i, j)),
        compiler_params=pltpu.CompilerParams(
            dimension_semantics=("parallel", "parallel")),
    )(x, w, b)


# -----------------------------------------------------------------------------
# Kernel 2: the serial tanh recurrence.
#   xp_ref : [T_blk, B, Hp] f32   pre-projected inputs (x @ W_ih + b), time-major
#   whh_ref: [Hp, Hp]       bf16  recurrent weights (same block every grid step
#                                 -> stays VMEM-resident, no re-DMA)
#   hs_ref : [T_blk, B, Hp] bf16  hidden-state outputs (lane-dense Hp)
#   h_ref  : [B, Hp]        f32   hidden state carried across grid steps (scratch)
# -----------------------------------------------------------------------------
def _rnn_recurrence_kernel(xp_ref, whh_ref, hs_ref, h_ref):
    @pl.when(pl.program_id(0) == 0)
    def _init():
        h_ref[...] = jnp.zeros_like(h_ref)

    t_blk = xp_ref.shape[0]

    def step(t, carry):
        pre = xp_ref[t] + jnp.dot(
            h_ref[...].astype(whh_ref.dtype), whh_ref[...],
            preferred_element_type=jnp.float32)
        h = jnp.tanh(pre)                       # f32 epilogue (safe on v5e too)
        h_ref[...] = h
        hs_ref[t] = h.astype(hs_ref.dtype)
        return carry

    lax.fori_loop(0, t_blk, step, 0, unroll=2)


def rnn_recurrence(x_proj, w_hh_bf16, *, t_blk=128):
    Tp, B, Hp = x_proj.shape
    t_blk = min(Tp, t_blk)
    assert Tp % t_blk == 0, "caller pads T to a multiple of t_blk"
    return pl.pallas_call(
        _rnn_recurrence_kernel,
        out_shape=jax.ShapeDtypeStruct((Tp, B, Hp), jnp.bfloat16),
        grid=(Tp // t_blk,),
        in_specs=[
            pl.BlockSpec((t_blk, B, Hp), lambda i: (i, 0, 0)),
            pl.BlockSpec((Hp, Hp), lambda i: (0, 0)),
        ],
        out_specs=pl.BlockSpec((t_blk, B, Hp), lambda i: (i, 0, 0)),
        scratch_shapes=[pltpu.VMEM((B, Hp), jnp.float32)],
        compiler_params=pltpu.CompilerParams(
            dimension_semantics=("arbitrary",)),   # serial carry over time
    )(x_proj, w_hh_bf16)


# -----------------------------------------------------------------------------
# Parameter preparation (done once, amortized over forward calls):
# pad H/V to multiples of 128, cast MXU weights to bf16, and precompute the
# projected embedding table  emb_table @ W_ih + (b_ih + b_hh)  -> [vocab, Hp].
# -----------------------------------------------------------------------------
def prepare_params(params, *, pad_index=0):
    emb = params["emb"]            # [vocab, E]
    w_ih = params["w_ih"]          # [E, H]
    w_hh = params["w_hh"]          # [H, H]
    b = params["b"]                # [1, H]  (= b_ih + b_hh)
    w_out = params["w_out"]        # [H, V]
    b_out = params["b_out"]        # [1, V]

    H = w_hh.shape[0]
    V = w_out.shape[1]
    Hp = _round_up(H, 128)
    Vp = _round_up(V, 128)

    w_ih_p = jnp.pad(w_ih, ((0, 0), (0, Hp - H)))
    b_p = jnp.pad(b, ((0, 0), (0, Hp - H)))
    w_hh_p = jnp.pad(w_hh, ((0, Hp - H), (0, Hp - H)))
    w_out_p = jnp.pad(w_out, ((0, Hp - H), (0, Vp - V)))
    b_out_p = jnp.pad(b_out, ((0, 0), (0, Vp - V)))

    # One-time batched input projection: removes T per-step matmuls and all
    # [T, B, E] traffic from the forward pass (padding row of emb is zero, so
    # emb_proj[pad] == b, identical to x=0 through the linear map).
    emb_proj = matmul_bias(emb.astype(jnp.bfloat16),
                           w_ih_p.astype(jnp.bfloat16),
                           b_p, out_dtype=jnp.float32)          # [vocab, Hp] f32

    return {
        "emb_proj": emb_proj,
        "w_hh": w_hh_p.astype(jnp.bfloat16),
        "w_out": w_out_p.astype(jnp.bfloat16),
        "b_out": b_out_p,                    # f32
        "V": V,
        "pad_index": pad_index,
    }


def lm_rnn_forward(tokens, prepared, *, t_blk=128):
    """tokens: int32 [B, T]  ->  logits float32 [B, V, T] (torch .permute(0,2,1))."""
    B, T = tokens.shape
    V = prepared["V"]
    Hp = prepared["w_hh"].shape[0]
    Vp = prepared["w_out"].shape[1]

    t_blk = min(T, t_blk)
    Tp = _round_up(T, t_blk)

    # Time-major token ids (cheap int transpose; avoids transposing [T,B,E]).
    tok_t = tokens.T                                            # [T, B]
    if Tp != T:
        tok_t = jnp.pad(tok_t, ((0, Tp - T), (0, 0)),
                        constant_values=prepared["pad_index"])

    # Phase 1 (glue): gather pre-projected embeddings -> [Tp, B, Hp] f32.
    # TODO(synk): could become a scalar-prefetch DMA gather inside the kernel.
    x_proj = jnp.take(prepared["emb_proj"], tok_t, axis=0)

    # Phase 2 (Pallas, serial over T): hidden states only, no output head.
    hs = rnn_recurrence(x_proj, prepared["w_hh"], t_blk=t_blk)  # [Tp,B,Hp] bf16

    # Phase 3 (Pallas, batched): logits = hs @ W_out + b_out over M = T*B rows.
    hs2d = hs[:T].reshape(T * B, Hp)
    logits2d = matmul_bias(hs2d, prepared["w_out"], prepared["b_out"],
                           out_dtype=jnp.float32)               # [T*B, Vp]

    logits = logits2d.reshape(T, B, Vp)[:, :, :V]               # [T, B, V]
    return jnp.transpose(logits, (1, 2, 0))                     # [B, V, T]


# -----------------------------------------------------------------------------
# Pure-JAX f32 reference (identical semantics) and synthetic init.
# -----------------------------------------------------------------------------
def lm_rnn_reference(tokens, params):
    emb = jnp.take(params["emb"], tokens, axis=0)               # [B, T, E]
    B, T, _ = emb.shape
    H = params["w_hh"].shape[0]

    def step(h, x):
        h_new = jnp.tanh(x @ params["w_ih"] + h @ params["w_hh"] + params["b"][0])
        return h_new, h_new

    _, hs = lax.scan(step, jnp.zeros((B, H), jnp.float32),
                     jnp.transpose(emb, (1, 0, 2)))             # [T, B, H]
    logits = hs @ params["w_out"] + params["b_out"][0]          # [T, B, V]
    return jnp.transpose(logits, (1, 2, 0))                     # [B, V, T]


def init_params(key, output_size, emb_size, hidden_size, pad_index=0):
    ks = jax.random.split(key, 7)
    emb_table = jax.random.normal(ks[0], (output_size, emb_size), jnp.float32)
    emb_table = emb_table.at[pad_index].set(0.0)

    s = 1.0 / jnp.sqrt(jnp.float32(hidden_size))
    w_ih = jax.random.uniform(ks[1], (emb_size, hidden_size), jnp.float32, -s, s)
    w_hh = jax.random.uniform(ks[2], (hidden_size, hidden_size), jnp.float32, -s, s)
    b_ih = jax.random.uniform(ks[3], (hidden_size,), jnp.float32, -s, s)
    b_hh = jax.random.uniform(ks[4], (hidden_size,), jnp.float32, -s, s)
    w_out = jax.random.uniform(ks[5], (hidden_size, output_size), jnp.float32, -s, s)
    b_out = jax.random.uniform(ks[6], (output_size,), jnp.float32, -s, s)

    return {
        "emb": emb_table,
        "w_ih": w_ih,
        "w_hh": w_hh,
        "b": (b_ih + b_hh)[None, :],
        "w_out": w_out,
        "b_out": b_out[None, :],
    }


if __name__ == "__main__":
    B, T = 2, 8
    EMB, HID, VOCAB = 32, 32, 64
    PAD = 0

    key = jax.random.PRNGKey(0)
    pkey, tkey = jax.random.split(key)
    params = init_params(pkey, output_size=VOCAB, emb_size=EMB,
                         hidden_size=HID, pad_index=PAD)
    tokens = jax.random.randint(tkey, (B, T), 0, VOCAB, dtype=jnp.int32)

    prepared = prepare_params(params, pad_index=PAD)
    fwd = jax.jit(lambda toks: lm_rnn_forward(toks, prepared))

    out = jax.block_until_ready(fwd(tokens))
    assert out.shape == (B, VOCAB, T), out.shape

    ref = jax.block_until_ready(lm_rnn_reference(tokens, params))
    # bf16 MXU operands with f32 accumulation -> slightly looser tolerance
    # than a pure-f32 comparison.
    assert jnp.allclose(out, ref, atol=5e-2, rtol=5e-2), \
        float(jnp.max(jnp.abs(out - ref)))

    print("KERNEL_OK")
</pallas_src>

<mosaic_0001>
module attributes {stable_mosaic.version = 11 : i64} {
  func.func @_matmul_bias_kernel(%arg0: i32, %arg1: i32, %arg2: memref<64x32xbf16, #tpu.memory_space<vmem>>, %arg3: memref<32x128xbf16, #tpu.memory_space<vmem>>, %arg4: memref<1x128xf32, #tpu.memory_space<vmem>>, %arg5: memref<64x128xf32, #tpu.memory_space<vmem>>) attributes {dimension_semantics = [#tpu.dimension_semantics<parallel>, #tpu.dimension_semantics<parallel>], iteration_bounds = array<i64: 1, 1>, scalar_prefetch = 0 : i64, scratch_operands = 0 : i64, tpu.core_type = #tpu.core_type<tc>, window_params = [{transform_indices = @transform_0, window_bounds = array<i64: 64, 32>}, {transform_indices = @transform_1, window_bounds = array<i64: 32, 128>}, {transform_indices = @transform_2, window_bounds = array<i64: 1, 128>}, {transform_indices = @transform_3, window_bounds = array<i64: 64, 128>}]} {
    %c0 = arith.constant 0 : index
    %c0_0 = arith.constant 0 : index
    %0 = vector.load %arg2[%c0, %c0_0] : memref<64x32xbf16, #tpu.memory_space<vmem>>, vector<64x32xbf16>
    %c0_1 = arith.constant 0 : index
    %c0_2 = arith.constant 0 : index
    %1 = vector.load %arg3[%c0_1, %c0_2] : memref<32x128xbf16, #tpu.memory_space<vmem>>, vector<32x128xbf16>
    %cst = arith.constant dense<0.000000e+00> : vector<64x128xf32>
    %2 = tpu.matmul %0, %1, %cst {dimension_numbers = #tpu.dot_dimension_numbers<[1], [0], [0], [1], [0, 0, 1, 1], [], []>} : vector<64x32xbf16>, vector<32x128xbf16>, vector<64x128xf32> -> vector<64x128xf32>
    %c0_3 = arith.constant 0 : index
    %c0_4 = arith.constant 0 : index
    %3 = vector.load %arg4[%c0_3, %c0_4] : memref<1x128xf32, #tpu.memory_space<vmem>>, vector<1x128xf32>
    %4 = vector.broadcast %3 : vector<1x128xf32> to vector<64x128xf32>
    %5 = arith.addf %2, %4 : vector<64x128xf32>
    %c0_5 = arith.constant 0 : index
    %c0_6 = arith.constant 0 : index
    %6 = vector.load %arg5[%c0_5, %c0_6] : memref<64x128xf32, #tpu.memory_space<vmem>>, vector<64x128xf32>
    tpu.vector_store %arg5[%c0_5, %c0_6], %5 {strides = array<i32>} : memref<64x128xf32, #tpu.memory_space<vmem>>, vector<64x128xf32>,
    return
  }
  func.func @transform_0(%arg0: i32, %arg1: i32) -> (i32, i32) {
    %c0_i32 = arith.constant 0 : i32
    %c0_i32_0 = arith.constant 0 : i32
    return %arg0, %c0_i32 : i32, i32
  }
  func.func @transform_1(%arg0: i32, %arg1: i32) -> (i32, i32) {
    %c0_i32 = arith.constant 0 : i32
    %c0_i32_0 = arith.constant 0 : i32
    return %c0_i32, %arg1 : i32, i32
  }
  func.func @transform_2(%arg0: i32, %arg1: i32) -> (i32, i32) {
    %c0_i32 = arith.constant 0 : i32
    %c0_i32_0 = arith.constant 0 : i32
    return %c0_i32, %arg1 : i32, i32
  }
  func.func @transform_3(%arg0: i32, %arg1: i32) -> (i32, i32) {
    %c0_i32 = arith.constant 0 : i32
    return %arg0, %arg1 : i32, i32
  }
}

</mosaic_0001>

<bundles_post_ra>
// kernel: tpu_custom_call.1
= control target key start
LH: loop header
LB: loop body
LE: loop exit
PB: predicated region body
PF: predicated region fallthrough
CT: control target
= control target key end

     0   :  { %vm67_vm0 = vcmask 261120   ;;  %s291_s0 = inlined_call_operand.vmem [shape: bf16[64,32], index: 0, kind: input, shape index: {}]   ;;  %s292_s1 = inlined_call_operand.vmem [shape: bf16[32,128], index: 1, kind: input, shape index: {}]   ;;  %s293_s2 = inlined_call_operand.vmem [shape: f32[1,128], index: 2, kind: input, shape index: {}]   ;;  %s294_s3 = inlined_call_operand.hbm [shape: f32[64,128], index: 3, kind: output, shape index: {}]  }
   0x1   :  { %v205_v0 = vld [vmem:[%s292_s1] sm:$0xff]   ;;  %v206_v1 = vld [vmem:[%s292_s1 + $0x8] sm:$0xff]   ;;  %v208_v3 = vld [vmem:[%s291_s0 + $0x10] sm:$0xff]  }
   0x2   :  { %186 = vmatprep.subr.bf16.mxu0 %v205_v0  ;;  %198 = vmatprep.subr.bf16.mxu1 %v205_v0  ;;  %v207_v2 = vld [vmem:[%s291_s0] sm:$0xff]   ;;  %v209_v4 = vld [vmem:[%s291_s0 + $0x8] sm:$0xff]   ;;  %v210_v5 = vld [vmem:[%s291_s0 + $0x18] sm:$0xff]  }
   0x3   :  { %187 = vmatpush3.bf16.msra.mxu0 %v205_v0  ;;  %200 = vmatpush3.bf16.msra.mxu1 %v205_v0 }
   0x4   :  { %188 = vmatprep.subr.bf16.mxu0 %v206_v1  ;;  %199 = vmatprep.subr.bf16.mxu1 %v206_v1 }
   0x5   :  { %190 = vmatprep.mubr.msk.bf16.mxu0 %vm67_vm0, %v207_v2  ;;  %194 = vmatprep.mubr.msk.bf16.mxu1 %vm67_vm0, %v208_v3 }
   0x6   :  { %8 = vsyncpa [#allocation3], 0  ;;  %v169_v6 = vld [vmem:[%s293_s2] ss:$0 sm:$0xff]  ;;  %s235_s25 = smov [#allocation2]  }
   0x7   :  { %189 = vmatpush3.bf16.msra.mxu0 %v206_v1  ;;  %201 = vmatpush3.bf16.msra.mxu1 %v206_v1  ;;  %s158_s26 = sshll.u32 %s235_s25, 4  ;;  %s159_s26 = int_to_ptr.vmem [resolvable:$true] %s158_s26 }
   0x8   :  { %s211_s0 = scalar_lea.vmem %s159_s26, 1024  ;;  %p216_p1 = scmp.lt.s32.totalorder %s159_s26, %s159_s26 }
   0x9   :  { %p212_p0 = scmp.ne.s32.totalorder %s159_s26, %s211_s0  ;;  %p217_p2 = scmp.lt.s32.totalorder %s211_s0, %s211_s0 }
   0xa   :  { %191 = vmatmul.mubr.msk.bf16.vlgmr.msra.gmra.mrb[0].mxu0 %vm67_vm0, %v209_v4  ;;  %195 = vmatmul.mubr.msk.bf16.vlgmr.msra.gmra.mrb[0].mxu1 %vm67_vm0, %v210_v5 }
   0xb   :  { %p218_p3 = por %p217_p2, %p216_p1 }
   0xd   :  { %p219_p4 = pnand %p218_p3, %p212_p0 }
  0xdd   :  { %v192_v7 = vpop.f32.mrb[0].mxu0  ;;  %v196_v8 = vpop.f32.mrb[0].mxu1 }
  0xde   :  { %v123_v9 = vadd.f32 %v192_v7, %v169_v6  ;;  %v139_v10 = vadd.f32 %v196_v8, %v169_v6  ;;  %v114_v11 = vpop.f32.mrb[1].mxu0  ;;  %v130_v12 = vpop.f32.mrb[1].mxu1 }
  0xdf   :  { %v115_v13 = vadd.f32 %v169_v6, %v114_v11  ;;  %v131_v14 = vadd.f32 %v169_v6, %v130_v12  ;;  %v193_v15 = vpop.f32.mrb[2].mxu0  ;;  %v197_v16 = vpop.f32.mrb[2].mxu1 }
  0xe0   :  { %147 = vst [vmem:[#allocation2 + $0x10] sm:$0xff] %v123_v9  ;;  %151 = vst [vmem:[#allocation2 + $0x30] sm:$0xff] %v139_v10  ;;  %v126_v17 = vadd.f32 %v193_v15, %v169_v6  ;;  %v142_v18 = vadd.f32 %v197_v16, %v169_v6  ;;  %v117_v19 = vpop.f32.mrb[3].mxu0  ;;  %v133_v20 = vpop.f32.mrb[3].mxu1 }
  0xe1   :  { %145 = vst [vmem:[#allocation2] sm:$0xff] %v115_v13  ;;  %149 = vst [vmem:[#allocation2 + $0x20] sm:$0xff] %v131_v14  ;;  %v118_v21 = vadd.f32 %v169_v6, %v117_v19  ;;  %v134_v22 = vadd.f32 %v169_v6, %v133_v20 }
  0xe2   :  { %148 = vst [vmem:[#allocation2 + $0x18] sm:$0xff] %v126_v17  ;;  %152 = vst [vmem:[#allocation2 + $0x38] sm:$0xff] %v142_v18 }
  0xe3   :  { %146 = vst [vmem:[#allocation2 + $0x8] sm:$0xff] %v118_v21  ;;  %150 = vst [vmem:[#allocation2 + $0x28] sm:$0xff] %v134_v22 }
  0xe4   :  { %222 = shalt.err (!%p219_p4)
}
  0xe5   :  { %s223_s28 = scalar_lea.hbm %s294_s3, 1024 }
  0xe6   :  { %p224_p5 = scmp.ne.s32.totalorder %s294_s3, %s223_s28  ;;  %p227_p6 = scmp.lt.u32.totalorder %s223_s28, %s294_s3 }
  0xe8   :  { %p229_p7 = pnand %p227_p6, %p224_p5 }
  0xea   :  { %232 = shalt.err (!%p229_p7)
}
  0xeb   :  { %s236_s6 = smov 128   ;;  %s237_s7 = smov 8  }
  0xec   :  { %164 = dma.vmem_to_hbm [thread:$0]  %s159_s26, 1024, %s294_s3, [#allocation3], %s236_s6, %s236_s6, %s237_s7  }
  0xed   :  { %233 = dma.done.wait [#allocation3], 1024  }
  0xee   :  { %234 = vsyncadd [#allocation3], 4294966272 }
  0xef   :  { %168 = vsyncpa [#allocation3], 1 }

</bundles_post_ra>
